<compile_context>
chip_gen: v7x
topology: tpu7x:2x2x1
jax: 0.10.0
libtpu: 0.0.40
codegen_flags: <defaults>
</compile_context>

<pallas_src>
import functools

import jax
import jax.numpy as jnp
from jax.experimental import pallas as pl
from jax.experimental.pallas import tpu as pltpu

# Model dims (hidden_feats1 must equal hidden_feats2 for the original forward
# to be shape-consistent, since conv2 is skipped).
NODE_FEATS = 16
EDGE_FEATS = 8
HIDDEN1 = 32
HIDDEN2 = 32
PRED_HIDDEN = 128
LN_EPS = 1e-5

EDGE_TILE_MAX = 1024   # K-tile over edges (multiple of 128)
NODE_TILE_MAX = 512    # lane tile over nodes (multiple of 128, VMEM-safe on v7x)


def _round_up(v, m):
    return (v + m - 1) // m * m


def _pick_tile(size, max_tile):
    """Return (tile, padded_size): tile is a multiple of 128, <= max_tile."""
    padded = _round_up(max(size, 1), 128)
    if padded <= max_tile:
        return padded, padded
    return max_tile, _round_up(size, max_tile)


# --------------------------------------------------------------------------
# Kernel A: edge-tiled scatter-add (transposed / lane-dense) + node update.
# Grid = (node_blocks [parallel], edge_tiles [arbitrary reduction]).
# --------------------------------------------------------------------------
def _aggregate_kernel(msgT_ref, scat_ref, xT_ref, waxT_ref, waaT_ref, bT_ref,
                      hT_ref, aggT_ref):
    f32 = jnp.float32
    e = pl.program_id(1)

    @pl.when(e == 0)
    def _():
        aggT_ref[...] = jnp.zeros_like(aggT_ref)

    # aggr='add' scatter as a lane-dense transposed matmul.  Operands live in
    # HBM as bf16 (halves the dominant DMA stream) and are upcast to f32 right
    # before the dot: keeps full accumulation precision and avoids the
    # BF16xBF16=F32 DotThunk limitation seen in the previous run.
    aggT_ref[...] += jnp.dot(msgT_ref[...].astype(f32),
                             scat_ref[...].astype(f32),
                             preferred_element_type=f32)

    @pl.when(e == pl.num_programs(1) - 1)
    def _():
        # GNNLayer.update: relu(W_apply([x | aggr_out])), computed transposed
        # so the output stays lane-dense along the node axis.
        hT = (jnp.dot(waxT_ref[...], xT_ref[...], preferred_element_type=f32)
              + jnp.dot(waaT_ref[...], aggT_ref[...], preferred_element_type=f32)
              + bT_ref[...])
        hT_ref[...] = jnp.maximum(hT, 0.0)


# --------------------------------------------------------------------------
# Kernel B: global_mean_pool + LayerNorm + predict1 + relu (tiny, runs once).
# --------------------------------------------------------------------------
def _readout_kernel(hT_ref, pool_ref, invc_ref, ln_w_ref, ln_b_ref,
                    w_pred_ref, b_pred_ref, out_ref):
    f32 = jnp.float32
    # global_mean_pool: 0/1 membership matmul (contract over nodes), exact
    # f32 1/count scaling applied after the matmul.
    g = jax.lax.dot_general(pool_ref[...], hT_ref[...],
                            dimension_numbers=(((1,), (1,)), ((), ())),
                            preferred_element_type=f32) * invc_ref[...]   # [B, H]

    # LayerNorm(hidden_feats2), eps=1e-5, affine.
    mean = jnp.mean(g, axis=-1, keepdims=True)
    var = jnp.mean((g - mean) * (g - mean), axis=-1, keepdims=True)
    gn = (g - mean) * jax.lax.rsqrt(var + LN_EPS)
    gn = gn * ln_w_ref[...] + ln_b_ref[...]

    # predict1 + relu (lane-dense [B, 128] output).
    out = jnp.dot(gn, w_pred_ref[...], preferred_element_type=f32) + b_pred_ref[...]
    out_ref[...] = jnp.maximum(out, 0.0)


# --------------------------------------------------------------------------
# Plain-JAX glue: add_self_loops(fill_value='mean'), symmetric normalization,
# fused per-edge message stage, 0/1 scatter & pooling matrices.
# --------------------------------------------------------------------------
def _preprocess(x, edge_index, edge_attr, batch, num_graphs, params,
                n_pad, ep_pad):
    f32 = jnp.float32
    n = x.shape[0]                      # assumes num_nodes == x.shape[0]
    row0, col0 = edge_index[0], edge_index[1]

    # add_self_loops with fill_value='mean': self-loop attr = mean of
    # edge_attr of edges whose target is that node (0 if none).
    sums = jnp.zeros((n, edge_attr.shape[1]), f32).at[col0].add(edge_attr.astype(f32))
    cnts = jnp.zeros((n,), f32).at[col0].add(1.0)
    loop_attr = jnp.where(cnts[:, None] > 0,
                          sums / jnp.maximum(cnts, 1.0)[:, None], 0.0)
    loop_idx = jnp.arange(n, dtype=edge_index.dtype)
    row = jnp.concatenate([row0, loop_idx])
    col = jnp.concatenate([col0, loop_idx])
    ea = jnp.concatenate([edge_attr.astype(f32), loop_attr], axis=0)  # [Ep, E_F]
    ep = row.shape[0]

    # Symmetric normalization: degree over targets (col), incl. self loops.
    deg = jnp.zeros((n,), f32).at[col].add(1.0)
    norm = jnp.where(deg > 0, jax.lax.rsqrt(jnp.maximum(deg, 1.0)), 0.0)
    ew = norm[row] * norm[col]                                        # [Ep]

    # Fused message stage (once per edge, in f32):
    #   msg = edge_weight * relu(x_j @ W_msg_x + edge_attr @ W_msg_e + b_msg)
    pre = (x[row].astype(f32) @ params["w_msg_x"]
           + ea @ params["w_msg_e"] + params["b_msg"])
    msg = ew[:, None] * jnp.maximum(pre, 0.0)                         # [Ep, NODE_FEATS]

    # Feature-major (lane-dense along edges) bf16 message stream, zero-padded:
    # padded edge columns are exactly zero, so they contribute nothing.
    msgT = jnp.zeros((NODE_FEATS, ep_pad), jnp.bfloat16)
    msgT = msgT.at[:, :ep].set(msg.T.astype(jnp.bfloat16))

    # Pure 0/1 scatter matrix, built directly in bf16, edge-major layout.
    # Padded edge rows stay all-zero.
    # TODO(synk): on v7x store scat as fp8 / on v5e-v6e as int8 (0/1 exact) and
    # upcast in-kernel; or replace the dense matrix with a scalar-prefetched
    # sparse scatter (sorted col indices + segment offsets) for large graphs.
    scat = jnp.zeros((ep_pad, n_pad), jnp.bfloat16)
    scat = scat.at[jnp.arange(ep), col].set(1.0)

    # Node features, feature-major, zero-padded.
    xT = jnp.zeros((NODE_FEATS, n_pad), f32).at[:, :n].set(x.T.astype(f32))

    # global_mean_pool: 0/1 membership and exact f32 1/count scaling.
    pool01 = jnp.zeros((num_graphs, n_pad), f32).at[batch, jnp.arange(n)].set(1.0)
    counts = pool01.sum(axis=1, keepdims=True)
    inv_cnt = 1.0 / jnp.maximum(counts, 1.0)                          # [B, 1]

    return msgT, scat, xT, pool01, inv_cnt


@functools.partial(jax.jit, static_argnums=(4,))
def gcn_forward(x, edge_index, edge_attr, batch, num_graphs, params):
    n = x.shape[0]
    ep = edge_index.shape[1] + n          # original edges + one self loop per node
    node_tile, n_pad = _pick_tile(n, NODE_TILE_MAX)
    edge_tile, ep_pad = _pick_tile(ep, EDGE_TILE_MAX)
    n_node_blocks = n_pad // node_tile
    n_edge_tiles = ep_pad // edge_tile

    msgT, scat, xT, pool01, inv_cnt = _preprocess(
        x, edge_index, edge_attr, batch, num_graphs, params, n_pad, ep_pad)

    waxT = params["w_apply_x"].T          # [HIDDEN1, NODE_FEATS]
    waaT = params["w_apply_a"].T          # [HIDDEN1, NODE_FEATS]
    b_applyT = params["b_apply"].T        # [HIDDEN1, 1]

    # ---- Kernel A: scatter-add over edge tiles, node update in finalize ----
    a_args = (msgT, scat, xT, waxT, waaT, b_applyT)
    a_in_specs = [
        pl.BlockSpec((NODE_FEATS, edge_tile), lambda nb, e: (0, e)),    # msgT
        pl.BlockSpec((edge_tile, node_tile), lambda nb, e: (e, nb)),    # scat
        pl.BlockSpec((NODE_FEATS, node_tile), lambda nb, e: (0, nb)),   # xT
        pl.BlockSpec((HIDDEN1, NODE_FEATS), lambda nb, e: (0, 0)),      # W_apply_x^T
        pl.BlockSpec((HIDDEN1, NODE_FEATS), lambda nb, e: (0, 0)),      # W_apply_a^T
        pl.BlockSpec((HIDDEN1, 1), lambda nb, e: (0, 0)),               # b_apply^T
    ]
    a_out_spec = pl.BlockSpec((HIDDEN1, node_tile), lambda nb, e: (0, nb))

    flops = (2 * ep_pad * n_pad * NODE_FEATS                # scatter matmul
             + 2 * n_pad * NODE_FEATS * HIDDEN1 * 2)        # node update
    bytes_accessed = (sum(a.size * a.dtype.itemsize for a in a_args)
                      + HIDDEN1 * n_pad * 4)

    hT = pl.pallas_call(
        _aggregate_kernel,
        out_shape=jax.ShapeDtypeStruct((HIDDEN1, n_pad), jnp.float32),
        grid_spec=pltpu.PrefetchScalarGridSpec(
            num_scalar_prefetch=0,
            grid=(n_node_blocks, n_edge_tiles),
            in_specs=a_in_specs,
            out_specs=a_out_spec,
            scratch_shapes=[pltpu.VMEM((NODE_FEATS, node_tile), jnp.float32)]),
        compiler_params=pltpu.CompilerParams(
            dimension_semantics=("parallel", "arbitrary")),
        cost_estimate=pl.CostEstimate(flops=flops, transcendentals=0,
                                      bytes_accessed=bytes_accessed),
    )(*a_args)

    # ---- Kernel B: pool + LayerNorm + predictor (tiny, one grid point) ----
    b_args = (hT, pool01, inv_cnt, params["ln_w"], params["ln_b"],
              params["w_pred"], params["b_pred"])
    b_in_specs = [pl.BlockSpec(a.shape, lambda i: (0, 0)) for a in b_args]

    out = pl.pallas_call(
        _readout_kernel,
        out_shape=jax.ShapeDtypeStruct((num_graphs, PRED_HIDDEN), jnp.float32),
        grid_spec=pltpu.PrefetchScalarGridSpec(
            num_scalar_prefetch=0,
            grid=(1,),
            in_specs=b_in_specs,
            out_specs=pl.BlockSpec((num_graphs, PRED_HIDDEN), lambda i: (0, 0))),
        compiler_params=pltpu.CompilerParams(
            dimension_semantics=("arbitrary",)),
    )(*b_args)
    return out


def init_params(key):
    """Deterministic PyTorch-Linear-style init (uniform +-1/sqrt(fan_in))."""
    ks = jax.random.split(key, 3)

    def lin(k, fan_in, fan_out):
        bound = fan_in ** -0.5
        kw, kb = jax.random.split(k)
        w = jax.random.uniform(kw, (fan_in, fan_out), jnp.float32, -bound, bound)
        b = jax.random.uniform(kb, (1, fan_out), jnp.float32, -bound, bound)
        return w, b

    w_msg, b_msg = lin(ks[0], NODE_FEATS + EDGE_FEATS, NODE_FEATS)
    w_apply, b_apply = lin(ks[1], NODE_FEATS * 2, HIDDEN1)
    w_pred, b_pred = lin(ks[2], HIDDEN2, PRED_HIDDEN)

    # TODO(synk): conv2 (second GNNLayer) params exist in __init__ but are
    # never used in GCN.forward, so they are intentionally not materialized.
    return dict(
        w_msg_x=w_msg[:NODE_FEATS], w_msg_e=w_msg[NODE_FEATS:], b_msg=b_msg,
        w_apply_x=w_apply[:NODE_FEATS], w_apply_a=w_apply[NODE_FEATS:],
        b_apply=b_apply,
        ln_w=jnp.ones((1, HIDDEN2), jnp.float32),   # nn.LayerNorm default affine
        ln_b=jnp.zeros((1, HIDDEN2), jnp.float32),
        w_pred=w_pred, b_pred=b_pred,
    )


if __name__ == "__main__":
    key = jax.random.PRNGKey(0)
    k_x, k_e, k_a, k_p = jax.random.split(key, 4)

    N, E, B = 12, 24, 2  # nodes, edges, graphs in the batch

    x = jax.random.normal(k_x, (N, NODE_FEATS), jnp.float32)
    edge_index = jax.random.randint(k_e, (2, E), 0, N).astype(jnp.int32)
    # ensure node N-1 appears so PyG's inferred num_nodes would equal N
    edge_index = edge_index.at[1, 0].set(N - 1)
    edge_attr = jax.random.normal(k_a, (E, EDGE_FEATS), jnp.float32)
    batch = jnp.concatenate([jnp.zeros(N // 2, jnp.int32),
                             jnp.ones(N - N // 2, jnp.int32)])

    params = init_params(k_p)

    out = gcn_forward(x, edge_index, edge_attr, batch, B, params)
    out = jax.block_until_ready(out)
    assert out.shape == (B, PRED_HIDDEN) and out.dtype == jnp.float32
    print("KERNEL_OK")
</pallas_src>

<mosaic_0001>
module attributes {stable_mosaic.version = 11 : i64} {
  func.func @_aggregate_kernel(%arg0: i32, %arg1: i32, %arg2: memref<16x128xbf16, #tpu.memory_space<vmem>>, %arg3: memref<128x128xbf16, #tpu.memory_space<vmem>>, %arg4: memref<16x128xf32, #tpu.memory_space<vmem>>, %arg5: memref<32x16xf32, #tpu.memory_space<vmem>>, %arg6: memref<32x16xf32, #tpu.memory_space<vmem>>, %arg7: memref<32x1xf32, #tpu.memory_space<vmem>>, %arg8: memref<32x128xf32, #tpu.memory_space<vmem>>, %arg9: memref<16x128xf32, #tpu.memory_space<vmem>>) attributes {dimension_semantics = [#tpu.dimension_semantics<parallel>, #tpu.dimension_semantics<arbitrary>], iteration_bounds = array<i64: 1, 1>, scalar_prefetch = 0 : i64, scratch_operands = 1 : i64, tpu.core_type = #tpu.core_type<tc>, window_params = [{transform_indices = @transform_0, window_bounds = array<i64: 16, 128>}, {transform_indices = @transform_1, window_bounds = array<i64: 128, 128>}, {transform_indices = @transform_2, window_bounds = array<i64: 16, 128>}, {pipeline_mode = #tpu.pipeline_mode<synchronous>, transform_indices = @transform_3, window_bounds = array<i64: 32, 16>}, {pipeline_mode = #tpu.pipeline_mode<synchronous>, transform_indices = @transform_4, window_bounds = array<i64: 32, 16>}, {pipeline_mode = #tpu.pipeline_mode<synchronous>, transform_indices = @transform_5, window_bounds = array<i64: 32, 1>}, {transform_indices = @transform_6, window_bounds = array<i64: 32, 128>}]} {
    %c0_i32 = arith.constant 0 : i32
    %0 = arith.cmpi eq, %arg1, %c0_i32 : i32
    %1 = arith.extui %0 : i1 to i32
    %c0_i32_0 = arith.constant 0 : i32
    %2 = arith.cmpi ne, %1, %c0_i32_0 : i32
    scf.if %2 {
      %cst_10 = arith.constant 0.000000e+00 : f32
      %14 = vector.broadcast %cst_10 : f32 to vector<16x128xf32>
      %c0_11 = arith.constant 0 : index
      %c0_12 = arith.constant 0 : index
      %15 = vector.load %arg9[%c0_11, %c0_12] : memref<16x128xf32, #tpu.memory_space<vmem>>, vector<16x128xf32>
      tpu.vector_store %arg9[%c0_11, %c0_12], %14 {strides = array<i32>} : memref<16x128xf32, #tpu.memory_space<vmem>>, vector<16x128xf32>,
    } else {
    }
    %c0 = arith.constant 0 : index
    %c0_1 = arith.constant 0 : index
    %3 = vector.load %arg9[%c0, %c0_1] : memref<16x128xf32, #tpu.memory_space<vmem>>, vector<16x128xf32>
    %c0_2 = arith.constant 0 : index
    %c0_3 = arith.constant 0 : index
    %4 = vector.load %arg2[%c0_2, %c0_3] : memref<16x128xbf16, #tpu.memory_space<vmem>>, vector<16x128xbf16>
    %5 = arith.extf %4 : vector<16x128xbf16> to vector<16x128xf32>
    %c0_4 = arith.constant 0 : index
    %c0_5 = arith.constant 0 : index
    %6 = vector.load %arg3[%c0_4, %c0_5] : memref<128x128xbf16, #tpu.memory_space<vmem>>, vector<128x128xbf16>
    %7 = arith.extf %6 : vector<128x128xbf16> to vector<128x128xf32>
    %cst = arith.constant dense<0.000000e+00> : vector<16x128xf32>
    %8 = tpu.matmul %5, %7, %cst {dimension_numbers = #tpu.dot_dimension_numbers<[1], [0], [0], [1], [0, 0, 1, 1], [], []>} : vector<16x128xf32>, vector<128x128xf32>, vector<16x128xf32> -> vector<16x128xf32>
    %9 = arith.addf %3, %8 : vector<16x128xf32>
    %c0_6 = arith.constant 0 : index
    %c0_7 = arith.constant 0 : index
    %10 = vector.load %arg9[%c0_6, %c0_7] : memref<16x128xf32, #tpu.memory_space<vmem>>, vector<16x128xf32>
    tpu.vector_store %arg9[%c0_6, %c0_7], %9 {strides = array<i32>} : memref<16x128xf32, #tpu.memory_space<vmem>>, vector<16x128xf32>,
    %c0_i32_8 = arith.constant 0 : i32
    %11 = arith.cmpi eq, %arg1, %c0_i32_8 : i32
    %12 = arith.extui %11 : i1 to i32
    %c0_i32_9 = arith.constant 0 : i32
    %13 = arith.cmpi ne, %12, %c0_i32_9 : i32
    scf.if %13 {
      %c0_10 = arith.constant 0 : index
      %c0_11 = arith.constant 0 : index
      %14 = vector.load %arg5[%c0_10, %c0_11] : memref<32x16xf32, #tpu.memory_space<vmem>>, vector<32x16xf32>
      %c0_12 = arith.constant 0 : index
      %c0_13 = arith.constant 0 : index
      %15 = vector.load %arg4[%c0_12, %c0_13] : memref<16x128xf32, #tpu.memory_space<vmem>>, vector<16x128xf32>
      %cst_14 = arith.constant dense<0.000000e+00> : vector<32x128xf32>
      %16 = tpu.matmul %14, %15, %cst_14 {dimension_numbers = #tpu.dot_dimension_numbers<[1], [0], [0], [1], [0, 0, 1, 1], [], []>} : vector<32x16xf32>, vector<16x128xf32>, vector<32x128xf32> -> vector<32x128xf32>
      %c0_15 = arith.constant 0 : index
      %c0_16 = arith.constant 0 : index
      %17 = vector.load %arg6[%c0_15, %c0_16] : memref<32x16xf32, #tpu.memory_space<vmem>>, vector<32x16xf32>
      %c0_17 = arith.constant 0 : index
      %c0_18 = arith.constant 0 : index
      %18 = vector.load %arg9[%c0_17, %c0_18] : memref<16x128xf32, #tpu.memory_space<vmem>>, vector<16x128xf32>
      %cst_19 = arith.constant dense<0.000000e+00> : vector<32x128xf32>
      %19 = tpu.matmul %17, %18, %cst_19 {dimension_numbers = #tpu.dot_dimension_numbers<[1], [0], [0], [1], [0, 0, 1, 1], [], []>} : vector<32x16xf32>, vector<16x128xf32>, vector<32x128xf32> -> vector<32x128xf32>
      %20 = arith.addf %16, %19 : vector<32x128xf32>
      %c0_20 = arith.constant 0 : index
      %c0_21 = arith.constant 0 : index
      %21 = vector.load %arg7[%c0_20, %c0_21] : memref<32x1xf32, #tpu.memory_space<vmem>>, vector<32x1xf32>
      %22 = vector.broadcast %21 : vector<32x1xf32> to vector<32x128xf32>
      %23 = arith.addf %20, %22 : vector<32x128xf32>
      %cst_22 = arith.constant 0.000000e+00 : f32
      %24 = vector.broadcast %cst_22 : f32 to vector<32x128xf32>
      %25 = arith.maximumf %23, %24 : vector<32x128xf32>
      %c0_23 = arith.constant 0 : index
      %c0_24 = arith.constant 0 : index
      %26 = vector.load %arg8[%c0_23, %c0_24] : memref<32x128xf32, #tpu.memory_space<vmem>>, vector<32x128xf32>
      tpu.vector_store %arg8[%c0_23, %c0_24], %25 {strides = array<i32>} : memref<32x128xf32, #tpu.memory_space<vmem>>, vector<32x128xf32>,
    } else {
    }
    return
  }
  func.func @transform_0(%arg0: i32, %arg1: i32) -> (i32, i32) {
    %c0_i32 = arith.constant 0 : i32
    %c0_i32_0 = arith.constant 0 : i32
    return %c0_i32, %arg1 : i32, i32
  }
  func.func @transform_1(%arg0: i32, %arg1: i32) -> (i32, i32) {
    %c0_i32 = arith.constant 0 : i32
    return %arg1, %arg0 : i32, i32
  }
  func.func @transform_2(%arg0: i32, %arg1: i32) -> (i32, i32) {
    %c0_i32 = arith.constant 0 : i32
    %c0_i32_0 = arith.constant 0 : i32
    return %c0_i32, %arg0 : i32, i32
  }
  func.func @transform_3(%arg0: i32, %arg1: i32) -> (i32, i32) {
    %c0_i32 = arith.constant 0 : i32
    %c0_i32_0 = arith.constant 0 : i32
    %c0_i32_1 = arith.constant 0 : i32
    return %c0_i32, %c0_i32_0 : i32, i32
  }
  func.func @transform_4(%arg0: i32, %arg1: i32) -> (i32, i32) {
    %c0_i32 = arith.constant 0 : i32
    %c0_i32_0 = arith.constant 0 : i32
    %c0_i32_1 = arith.constant 0 : i32
    return %c0_i32, %c0_i32_0 : i32, i32
  }
  func.func @transform_5(%arg0: i32, %arg1: i32) -> (i32, i32) {
    %c0_i32 = arith.constant 0 : i32
    %c0_i32_0 = arith.constant 0 : i32
    %c0_i32_1 = arith.constant 0 : i32
    return %c0_i32, %c0_i32_0 : i32, i32
  }
  func.func @transform_6(%arg0: i32, %arg1: i32) -> (i32, i32) {
    %c0_i32 = arith.constant 0 : i32
    %c0_i32_0 = arith.constant 0 : i32
    return %c0_i32, %arg0 : i32, i32
  }
}

module attributes {stable_mosaic.version = 11 : i64} {
  func.func @_readout_kernel(%arg0: i32, %arg1: memref<32x128xf32, #tpu.memory_space<vmem>>, %arg2: memref<2x128xf32, #tpu.memory_space<vmem>>, %arg3: memref<2x1xf32, #tpu.memory_space<vmem>>, %arg4: memref<1x32xf32, #tpu.memory_space<vmem>>, %arg5: memref<1x32xf32, #tpu.memory_space<vmem>>, %arg6: memref<32x128xf32, #tpu.memory_space<vmem>>, %arg7: memref<1x128xf32, #tpu.memory_space<vmem>>, %arg8: memref<2x128xf32, #tpu.memory_space<vmem>>) attributes {dimension_semantics = [#tpu.dimension_semantics<arbitrary>], iteration_bounds = array<i64: 1>, scalar_prefetch = 0 : i64, scratch_operands = 0 : i64, tpu.core_type = #tpu.core_type<tc>, window_params = [{pipeline_mode = #tpu.pipeline_mode<synchronous>, transform_indices = @transform_0, window_bounds = array<i64: 32, 128>}, {pipeline_mode = #tpu.pipeline_mode<synchronous>, transform_indices = @transform_1, window_bounds = array<i64: 2, 128>}, {pipeline_mode = #tpu.pipeline_mode<synchronous>, transform_indices = @transform_2, window_bounds = array<i64: 2, 1>}, {pipeline_mode = #tpu.pipeline_mode<synchronous>, transform_indices = @transform_3, window_bounds = array<i64: 1, 32>}, {pipeline_mode = #tpu.pipeline_mode<synchronous>, transform_indices = @transform_4, window_bounds = array<i64: 1, 32>}, {pipeline_mode = #tpu.pipeline_mode<synchronous>, transform_indices = @transform_5, window_bounds = array<i64: 32, 128>}, {pipeline_mode = #tpu.pipeline_mode<synchronous>, transform_indices = @transform_6, window_bounds = array<i64: 1, 128>}, {pipeline_mode = #tpu.pipeline_mode<synchronous>, transform_indices = @transform_7, window_bounds = array<i64: 2, 128>}]} {
    %c0 = arith.constant 0 : index
    %c0_0 = arith.constant 0 : index
    %0 = vector.load %arg2[%c0, %c0_0] : memref<2x128xf32, #tpu.memory_space<vmem>>, vector<2x128xf32>
    %c0_1 = arith.constant 0 : index
    %c0_2 = arith.constant 0 : index
    %1 = vector.load %arg1[%c0_1, %c0_2] : memref<32x128xf32, #tpu.memory_space<vmem>>, vector<32x128xf32>
    %cst = arith.constant dense<0.000000e+00> : vector<2x32xf32>
    %2 = tpu.matmul %0, %1, %cst {dimension_numbers = #tpu.dot_dimension_numbers<[1], [1], [0], [0], [0, 0, 1, 0], [], []>} : vector<2x128xf32>, vector<32x128xf32>, vector<2x32xf32> -> vector<2x32xf32>
    %c0_3 = arith.constant 0 : index
    %c0_4 = arith.constant 0 : index
    %3 = vector.load %arg3[%c0_3, %c0_4] : memref<2x1xf32, #tpu.memory_space<vmem>>, vector<2x1xf32>
    %4 = vector.broadcast %3 : vector<2x1xf32> to vector<2x32xf32>
    %5 = arith.mulf %2, %4 : vector<2x32xf32>
    %cst_5 = arith.constant dense<0.000000e+00> : vector<2xf32>
    %6 = vector.multi_reduction <add>, %5, %cst_5 [1] : vector<2x32xf32> to vector<2xf32>
    %7 = vector.shape_cast %6 : vector<2xf32> to vector<2x1xf32>
    %cst_6 = arith.constant 3.200000e+01 : f32
    %8 = vector.broadcast %cst_6 : f32 to vector<2x1xf32>
    %9 = arith.divf %7, %8 : vector<2x1xf32>
    %10 = vector.broadcast %9 : vector<2x1xf32> to vector<2x32xf32>
    %11 = arith.subf %5, %10 : vector<2x32xf32>
    %12 = vector.broadcast %9 : vector<2x1xf32> to vector<2x32xf32>
    %13 = arith.subf %5, %12 : vector<2x32xf32>
    %14 = arith.mulf %11, %13 : vector<2x32xf32>
    %cst_7 = arith.constant dense<0.000000e+00> : vector<2xf32>
    %15 = vector.multi_reduction <add>, %14, %cst_7 [1] : vector<2x32xf32> to vector<2xf32>
    %16 = vector.shape_cast %15 : vector<2xf32> to vector<2x1xf32>
    %cst_8 = arith.constant 3.200000e+01 : f32
    %17 = vector.broadcast %cst_8 : f32 to vector<2x1xf32>
    %18 = arith.divf %16, %17 : vector<2x1xf32>
    %19 = vector.broadcast %9 : vector<2x1xf32> to vector<2x32xf32>
    %20 = arith.subf %5, %19 : vector<2x32xf32>
    %cst_9 = arith.constant 9.99999974E-6 : f32
    %21 = vector.broadcast %cst_9 : f32 to vector<2x1xf32>
    %22 = arith.addf %18, %21 : vector<2x1xf32>
    %23 = math.rsqrt %22 : vector<2x1xf32>
    %24 = vector.broadcast %23 : vector<2x1xf32> to vector<2x32xf32>
    %25 = arith.mulf %20, %24 : vector<2x32xf32>
    %c0_10 = arith.constant 0 : index
    %c0_11 = arith.constant 0 : index
    %26 = vector.load %arg4[%c0_10, %c0_11] : memref<1x32xf32, #tpu.memory_space<vmem>>, vector<1x32xf32>
    %27 = vector.broadcast %26 : vector<1x32xf32> to vector<2x32xf32>
    %28 = arith.mulf %25, %27 : vector<2x32xf32>
    %c0_12 = arith.constant 0 : index
    %c0_13 = arith.constant 0 : index
    %29 = vector.load %arg5[%c0_12, %c0_13] : memref<1x32xf32, #tpu.memory_space<vmem>>, vector<1x32xf32>
    %30 = vector.broadcast %29 : vector<1x32xf32> to vector<2x32xf32>
    %31 = arith.addf %28, %30 : vector<2x32xf32>
    %c0_14 = arith.constant 0 : index
    %c0_15 = arith.constant 0 : index
    %32 = vector.load %arg6[%c0_14, %c0_15] : memref<32x128xf32, #tpu.memory_space<vmem>>, vector<32x128xf32>
    %cst_16 = arith.constant dense<0.000000e+00> : vector<2x128xf32>
    %33 = tpu.matmul %31, %32, %cst_16 {dimension_numbers = #tpu.dot_dimension_numbers<[1], [0], [0], [1], [0, 0, 1, 1], [], []>} : vector<2x32xf32>, vector<32x128xf32>, vector<2x128xf32> -> vector<2x128xf32>
    %c0_17 = arith.constant 0 : index
    %c0_18 = arith.constant 0 : index
    %34 = vector.load %arg7[%c0_17, %c0_18] : memref<1x128xf32, #tpu.memory_space<vmem>>, vector<1x128xf32>
    %35 = vector.broadcast %34 : vector<1x128xf32> to vector<2x128xf32>
    %36 = arith.addf %33, %35 : vector<2x128xf32>
    %cst_19 = arith.constant 0.000000e+00 : f32
    %37 = vector.broadcast %cst_19 : f32 to vector<2x128xf32>
    %38 = arith.maximumf %36, %37 : vector<2x128xf32>
    %c0_20 = arith.constant 0 : index
    %c0_21 = arith.constant 0 : index
    %39 = vector.load %arg8[%c0_20, %c0_21] : memref<2x128xf32, #tpu.memory_space<vmem>>, vector<2x128xf32>
    tpu.vector_store %arg8[%c0_20, %c0_21], %38 {strides = array<i32>} : memref<2x128xf32, #tpu.memory_space<vmem>>, vector<2x128xf32>,
    return
  }
  func.func @transform_0(%arg0: i32) -> (i32, i32) {
    %c0_i32 = arith.constant 0 : i32
    %c0_i32_0 = arith.constant 0 : i32
    %c0_i32_1 = arith.constant 0 : i32
    return %c0_i32, %c0_i32_0 : i32, i32
  }
  func.func @transform_1(%arg0: i32) -> (i32, i32) {
    %c0_i32 = arith.constant 0 : i32
    %c0_i32_0 = arith.constant 0 : i32
    %c0_i32_1 = arith.constant 0 : i32
    return %c0_i32, %c0_i32_0 : i32, i32
  }
  func.func @transform_2(%arg0: i32) -> (i32, i32) {
    %c0_i32 = arith.constant 0 : i32
    %c0_i32_0 = arith.constant 0 : i32
    %c0_i32_1 = arith.constant 0 : i32
    return %c0_i32, %c0_i32_0 : i32, i32
  }
  func.func @transform_3(%arg0: i32) -> (i32, i32) {
    %c0_i32 = arith.constant 0 : i32
    %c0_i32_0 = arith.constant 0 : i32
    %c0_i32_1 = arith.constant 0 : i32
    return %c0_i32, %c0_i32_0 : i32, i32
  }
  func.func @transform_4(%arg0: i32) -> (i32, i32) {
    %c0_i32 = arith.constant 0 : i32
    %c0_i32_0 = arith.constant 0 : i32
    %c0_i32_1 = arith.constant 0 : i32
    return %c0_i32, %c0_i32_0 : i32, i32
  }
  func.func @transform_5(%arg0: i32) -> (i32, i32) {
    %c0_i32 = arith.constant 0 : i32
    %c0_i32_0 = arith.constant 0 : i32
    %c0_i32_1 = arith.constant 0 : i32
    return %c0_i32, %c0_i32_0 : i32, i32
  }
  func.func @transform_6(%arg0: i32) -> (i32, i32) {
    %c0_i32 = arith.constant 0 : i32
    %c0_i32_0 = arith.constant 0 : i32
    %c0_i32_1 = arith.constant 0 : i32
    return %c0_i32, %c0_i32_0 : i32, i32
  }
  func.func @transform_7(%arg0: i32) -> (i32, i32) {
    %c0_i32 = arith.constant 0 : i32
    %c0_i32_0 = arith.constant 0 : i32
    %c0_i32_1 = arith.constant 0 : i32
    return %c0_i32, %c0_i32_0 : i32, i32
  }
}

</mosaic_0001>

<bundles_post_ra>
// kernel: mul.4
= control target key start
LH: loop header
LB: loop body
LE: loop exit
PB: predicated region body
PF: predicated region fallthrough
CT: control target
= control target key end

     0   :  { %s34_s0 = inlined_call_operand.vmem [shape: f32[36], index: 0, kind: input, shape index: {}]   ;;  %s35_s1 = inlined_call_operand.vmem [shape: f32[36], index: 1, kind: input, shape index: {}]   ;;  %s36_s2 = inlined_call_operand.vmem [shape: f32[36], index: 2, kind: output, shape index: {}]  }
   0x1   :  { %v3_v0 = vld [vmem:[%s34_s0] sm:$0x1] }
   0x2   :  { %v4_v1 = vld [vmem:[%s35_s1] sm:$0x1] }
   0x3   :  { %v7_v2 = vmul.f32 %v4_v1, %v3_v0 }
   0x5   :  { %9 = vst [vmem:[%s36_s2] sm:$0x1] %v7_v2 }

// kernel: gcn_forward.2
= control target key start
LH: loop header
LB: loop body
LE: loop exit
PB: predicated region body
PF: predicated region fallthrough
CT: control target
= control target key end

     0   :  { %vm161_vm0 = vcmask 130048   ;;  %v579_v12 = vmov 0   ;;  %s704_s1 = inlined_call_operand.vmem [shape: bf16[128,128], index: 1, kind: input, shape index: {}]   ;;  %s705_s0 = inlined_call_operand.vmem [shape: bf16[16,128], index: 0, kind: input, shape index: {}]   ;;  %s706_s4 = inlined_call_operand.vmem [shape: f32[32,16], index: 4, kind: input, shape index: {}]   ;;  %s707_s5 = inlined_call_operand.vmem [shape: f32[32,1], index: 5, kind: input, shape index: {}]   ;;  %s708_s2 = inlined_call_operand.vmem [shape: f32[16,128], index: 2, kind: input, shape index: {}]   ;;  %s709_s3 = inlined_call_operand.vmem [shape: f32[32,16], index: 3, kind: input, shape index: {}]   ;;  %s710_s6 = inlined_call_operand.vmem [shape: f32[32,128], index: 6, kind: output, shape index: {}]  }
   0x1   :  { %v409_v0 = vld [vmem:[%s704_s1] sm:$0xff]   ;;  %v440_v1 = vld [vmem:[%s704_s1 + $0x8] sm:$0xff]   ;;  %v441_v4 = vld [vmem:[%s704_s1 + $0x10] sm:$0xff]   ;;  %577 = vset.pattern.permute.xlu0 %v579_v12  ;;  %578 = vset.pattern.permute.xlu1 %v579_v12 }
   0x2   :  { %533 = vmatprep.subr.bf16.mxu0 %v409_v0  ;;  %v405_v2 = vld [vmem:[%s705_s0] sm:$0xff]   ;;  %v442_v5 = vld [vmem:[%s704_s1 + $0x18] sm:$0xff]   ;;  %v444_v7 = vld [vmem:[%s704_s1 + $0x28] sm:$0xff]  }
   0x3   :  { %535 = vmatpush3.bf16.msra.mxu0 %v409_v0  ;;  %v406_v3 = vunpack.c.l.bf16 %v405_v2  ;;  %v443_v6 = vld [vmem:[%s704_s1 + $0x20] sm:$0xff]   ;;  %v445_v8 = vld [vmem:[%s704_s1 + $0x30] sm:$0xff]   ;;  %v446_v9 = vld [vmem:[%s704_s1 + $0x38] sm:$0xff]   ;;  %v407_v10 = vunpack.c.h.bf16 %v405_v2 }
   0x4   :  { %537 = vmatprep.subr.bf16.mxu0 %v440_v1  ;;  %v155_v11 = vld [vmem:[%s706_s4] sm:$0xff]  ;;  %v358_v14 = vld [vmem:[%s707_s5 + $0x10] sm:$0xff]  ;;  %v357_v15 = vld [vmem:[%s707_s5 + $0x8] sm:$0xff] }
   0x5   :  { %509 = vmatprep.mubr.f32.mxu0 %v406_v3  ;;  %516 = vmatprep.mubr.msk.f32.mxu1 %vm161_vm0, %v155_v11  ;;  %v356_v13 = vld [vmem:[%s707_s5] sm:$0xff]  ;;  %v359_v16 = vld [vmem:[%s707_s5 + $0x18] sm:$0xff]  ;;  %v154_v18 = vld [vmem:[%s708_s2 + $0x8] sm:$0xff] }
   0x6   :  { %362 = vperm.xlu0 %577, %v356_v13   ;;  %372 = vperm.xlu1 %578, %v358_v14   ;;  %v153_v17 = vld [vmem:[%s708_s2] sm:$0xff]  ;;  %v156_v23 = vld [vmem:[%s706_s4 + $0x8] sm:$0xff]  ;;  %v157_v24 = vld [vmem:[%s706_s4 + $0x10] sm:$0xff] }
   0x7   :  { %539 = vmatpush3.bf16.msra.mxu0 %v440_v1  ;;  %v568_v22 = vpack.c.bf16 %v154_v18, %v153_v17  ;;  %v158_v25 = vld [vmem:[%s706_s4 + $0x18] sm:$0xff]  ;;  %v149_v26 = vld [vmem:[%s709_s3] sm:$0xff]  ;;  %v150_v27 = vld [vmem:[%s709_s3 + $0x8] sm:$0xff] }
   0x8   :  { %541 = vmatprep.subr.bf16.mxu0 %v441_v4  ;;  %v151_v28 = vld [vmem:[%s709_s3 + $0x10] sm:$0xff]  ;;  %v152_v29 = vld [vmem:[%s709_s3 + $0x18] sm:$0xff] }
   0xa   :  { %367 = vperm.xlu0 %577, %v357_v15   ;;  %377 = vperm.xlu1 %578, %v359_v16  }
   0xb   :  { %543 = vmatpush3.bf16.msra.mxu0 %v441_v4 }
   0xc   :  { %545 = vmatprep.subr.bf16.mxu0 %v442_v5 }
   0xf   :  { %547 = vmatpush3.bf16.msra.mxu0 %v442_v5 }
  0x10   :  { %549 = vmatprep.subr.bf16.mxu0 %v443_v6 }
  0x13   :  { %551 = vmatpush3.bf16.msra.mxu0 %v443_v6 }
  0x14   :  { %553 = vmatprep.subr.bf16.mxu0 %v444_v7 }
  0x17   :  { %555 = vmatpush3.bf16.msra.mxu0 %v444_v7 }
  0x18   :  { %557 = vmatprep.subr.bf16.mxu0 %v445_v8 }
  0x1b   :  { %559 = vmatpush3.bf16.msra.mxu0 %v445_v8 }
  0x1c   :  { %561 = vmatprep.subr.bf16.mxu0 %v446_v9 }
  0x1f   :  { %563 = vmatpush3.bf16.msra.mxu0 %v446_v9 }
  0x22   :  { %510 = vmatmul.mubr.f32.vlgmr.msra.gmra.mrb[0].mxu0 %v407_v10 }
  0x85   :  { %v363_v30 = vpop.permute.xlu0 %362  ;;  %v373_v31 = vpop.permute.xlu1 %372 }
  0x89   :  { %v368_v32 = vpop.permute.xlu0 %367  ;;  %v378_v39 = vpop.permute.xlu1 %377 }
  0xf5   :  { %v511_v19 = vpop.f32.mrb[0].mxu0 }
  0xf6   :  { %v133_v20 = vpop.f32.mrb[1].mxu0 }
  0xf7   :  { %v564_v21 = vpack.c.bf16 %v511_v19, %v133_v20 }
  0xf9   :  { %565 = vmatprep.subr.bf16.mxu1 %v564_v21 }
  0xfa   :  { %567 = vmatpush3.bf16.msra.mxu1 %v564_v21 }
  0xfb   :  { %569 = vmatprep.subr.bf16.mxu1 %v568_v22 }
  0xfd   :  { %517 = vmatmul.mubr.msk.f32.vlgmr.msra.gmra.mrb[0].mxu1 %vm161_vm0, %v156_v23 }
  0xfe   :  { %571 = vmatpush3.bf16.msra.mxu1 %v568_v22  ;;  %519 = vmatprep.mubr.msk.f32.mxu1 %vm161_vm0, %v157_v24 }
 0x101   :  { %520 = vmatmul.mubr.msk.f32.gmra.mrb[2].mxu1 %vm161_vm0, %v158_v25 }
 0x102   :  { %526 = vmatprep.mubr.msk.f32.mxu1 %vm161_vm0, %v149_v26 }
 0x105   :  { %527 = vmatmul.mubr.msk.f32.vlgmr.msra.gmra.mrb[0].mxu1 %vm161_vm0, %v150_v27 }
 0x106   :  { %529 = vmatprep.mubr.msk.f32.mxu1 %vm161_vm0, %v151_v28 }
 0x109   :  { %530 = vmatmul.mubr.msk.f32.gmra.mrb[2].mxu1 %vm161_vm0, %v152_v29 }
 0x1d8   :  { %v528_v33 = vpop.f32.mrb[0].mxu1 }
 0x1d9   :  { %v381_v34 = vadd.f32 %v528_v33, %v368_v32  ;;  %v337_v35 = vpop.f32.mrb[1].mxu1 }
 0x1da   :  { %v380_v36 = vadd.f32 %v363_v30, %v337_v35 }
 0x1db   :  { %v385_v37 = vmax.f32 %v381_v34, 0.0 }
 0x1dc   :  { %v384_v38 = vmax.f32 %v380_v36, 0.0  ;;  %v531_v40 = vpop.f32.mrb[2].mxu1 }
 0x1dd   :  { %389 = vst [vmem:[%s710_s6 + $0x8] sm:$0xff] %v385_v37  ;;  %v383_v41 = vadd.f32 %v531_v40, %v378_v39  ;;  %v347_v42 = vpop.f32.mrb[3].mxu1 }
 0x1de   :  { %388 = vst [vmem:[%s710_s6] sm:$0xff] %v384_v38  ;;  %v382_v43 = vadd.f32 %v373_v31, %v347_v42 }
 0x1df   :  { %v387_v44 = vmax.f32 %v383_v41, 0.0 }
 0x1e0   :  { %v386_v45 = vmax.f32 %v382_v43, 0.0 }
 0x1e1   :  { %391 = vst [vmem:[%s710_s6 + $0x18] sm:$0xff] %v387_v44 }
 0x1e2   :  { %390 = vst [vmem:[%s710_s6 + $0x10] sm:$0xff] %v386_v45 }

// kernel: gcn_forward.3
= control target key start
LH: loop header
LB: loop body
LE: loop exit
PB: predicated region body
PF: predicated region fallthrough
CT: control target
= control target key end

     0   :  { %v321_v2 = vmov 0.0|0.0   ;;  %vm322_vm0 = vmmov 0   ;;  %v323_v4 = vmov 0.0   ;;  %v324_v6 = vmov 0   ;;  %s417_s0 = inlined_call_operand.vmem [shape: f32[32,128], index: 0, kind: input, shape index: {}]   ;;  %s418_s1 = inlined_call_operand.vmem [shape: f32[2,128], index: 1, kind: input, shape index: {}]   ;;  %s419_s2 = inlined_call_operand.vmem [shape: f32[2,1], index: 2, kind: input, shape index: {}]   ;;  %s420_s3 = inlined_call_operand.vmem [shape: f32[1,32], index: 3, kind: input, shape index: {}]   ;;  %s421_s4 = inlined_call_operand.vmem [shape: f32[1,32], index: 4, kind: input, shape index: {}]   ;;  %s422_s5 = inlined_call_operand.vmem [shape: f32[32,128], index: 5, kind: input, shape index: {}]   ;;  %s423_s6 = inlined_call_operand.vmem [shape: f32[1,128], index: 6, kind: input, shape index: {}]   ;;  %s424_s7 = inlined_call_operand.hbm [shape: f32[2,128], index: 7, kind: output, shape index: {}]  }
   0x1   :  { %v28_v0 = vld [vmem:[%s417_s0] sm:$0xff]  ;;  %v29_v1 = vld [vmem:[%s417_s0 + $0x8] sm:$0xff]  ;;  %277 = vmatprep.subr.bf16.mxu0 %v321_v2  ;;  %263 = vmatprep.mubr.msk.f32.mxu0 %vm322_vm0, %v323_v4 }
   0x2   :  { %v278_v3 = vpack.c.bf16 %v29_v1, %v28_v0  ;;  %v102_v5 = vld [vmem:[%s419_s2] sm:$0x3]  ;;  %294 = vset.pattern.permute.xlu0 %v324_v6  ;;  %283 = vmatprep.subr.bf16.mxu1 %v321_v2 }
   0x3   :  { %12 = vsyncpa [#allocation3], 0  ;;  %105 = vperm.xlu0 %294, %v102_v5   ;;  %v30_v7 = vld [vmem:[%s417_s0 + $0x10] sm:$0xff]  ;;  %v31_v8 = vld [vmem:[%s417_s0 + $0x18] sm:$0xff]  ;;  %274 = vmatprep.mubr.msk.f32.mxu1 %vm322_vm0, %v323_v4  ;;  %vm109_vm1 = vcmask 254976   ;;  %vm151_vm2 = vcmask 261120  }
   0x4   :  { %279 = vmatpush3.bf16.xpose.msra.mxu0 %v278_v3  ;;  %v281_v9 = vpack.c.bf16 %v31_v8, %v30_v7  ;;  %v27_v10 = vld [vmem:[%s418_s1] sm:$0x3]  ;;  %v141_v22 = vld [vmem:[%s422_s5 + $0x8] sm:$0xff]  ;;  %v142_v23 = vld [vmem:[%s422_s5 + $0x10] sm:$0xff]  ;;  %s325_s23 = smov [#allocation2]  }
   0x5   :  { %280 = vmatprep.subr.bf16.mxu0 %v321_v2  ;;  %v140_v21 = vld [vmem:[%s422_s5] sm:$0xff]  ;;  %v143_v25 = vld [vmem:[%s422_s5 + $0x18] sm:$0xff]  ;;  %s233_s24 = sshll.u32 %s325_s23, 4  ;;  %s234_s24 = int_to_ptr.vmem [resolvable:$true] %s233_s24 }
   0x6   :  { %v284_v24 = vpack.c.bf16 %v141_v22, %v140_v21  ;;  %v287_v26 = vpack.c.bf16 %v143_v25, %v142_v23  ;;  %v241_v31 = vld [vmem:[%s420_s3] ss:$0 sm:$0xff]  ;;  %s297_s3 = scalar_lea.vmem %s234_s24, 32  ;;  %p302_p1 = scmp.lt.s32.totalorder %s234_s24, %s234_s24 }
   0x7   :  { %v242_v33 = vld [vmem:[%s421_s4] ss:$0 sm:$0xff]  ;;  %p298_p0 = scmp.ne.s32.totalorder %s234_s24, %s297_s3  ;;  %p303_p2 = scmp.lt.s32.totalorder %s297_s3, %s297_s3 }
   0x8   :  { %285 = vmatpush3.bf16.msra.mxu1 %v284_v24  ;;  %v243_v36 = vld [vmem:[%s423_s6] ss:$0 sm:$0xff] }
   0x9   :  { %286 = vmatprep.subr.bf16.mxu1 %v321_v2  ;;  %p304_p3 = por %p303_p2, %p302_p1 }
   0xb   :  { %p305_p4 = pnand %p304_p3, %p298_p0 }
   0xc   :  { %282 = vmatpush3.bf16.xpose.msra.mxu0 %v281_v9  ;;  %288 = vmatpush3.bf16.msra.mxu1 %v287_v26 }
  0x13   :  { %264 = vmatmul.mubr.f32.vlgmr.msra.gmra.mrb[0].mxu0 %v27_v10 }
  0x82   :  { %v106_v11 = vpop.permute.xlu0 %105 }
  0xe6   :  { %v98_v12 = vpop.f32.mrb[0].mxu0 }
  0xe7   :  { %v108_v13 = vmul.f32 %v106_v11, %v98_v12  ;;  %v265_v14 = vpop.f32.mrb[1].mxu0 }
  0xe9   :  { %v110_v15 = vsel %vm109_vm1, %v108_v13, 0.0 }
  0xea   :  { %111 = vadd.xlane.f32.xlu0 %v110_v15 }
 0x177   :  { %v112_v16 = vpop.xlane.xlu0 %111 }
 0x178   :  { %v114_v17 = vmul.f32 0.03125, %v112_v16 }
 0x17a   :  { %v115_v18 = vsub.f32 %v108_v13, %v114_v17 }
 0x17c   :  { %v116_v19 = vmul.f32 %v115_v18, %v115_v18 }
 0x17e   :  { %v117_v20 = vsel %vm109_vm1, %v116_v19, 0.0 }
 0x17f   :  { %118 = vadd.xlane.f32.xlu1 %v117_v20 }
 0x20c   :  { %v119_v27 = vpop.xlane.xlu1 %118 }
 0x20d   :  { %v120_v28 = vmul.f32 0.03125, %v119_v27 }
 0x20f   :  { %v121_v29 = vadd.f32 1e-05, %v120_v28 }
 0x211   :  { %295 = vrsqrt.f32 %v121_v29 }
 0x21b   :  { %v296_v30 = vpop.eup %295 }
 0x21c   :  { %v123_v32 = vmul.f32 %v296_v30, %v115_v18 }
 0x21e   :  { %v131_v34 = vmul.f32 %v241_v31, %v123_v32 }
 0x220   :  { %v139_v35 = vadd.f32 %v242_v33, %v131_v34 }
 0x222   :  { %275 = vmatmul.mubr.msk.f32.vlgmr.msra.gmra.mrb[0].mxu1 %vm151_vm2, %v139_v35 }
 0x2f5   :  { %v221_v37 = vpop.f32.mrb[0].mxu1 }
 0x2f6   :  { %v222_v38 = vadd.f32 %v243_v36, %v221_v37  ;;  %v276_v39 = vpop.f32.mrb[1].mxu1 }
 0x2f8   :  { %v225_v40 = vmax.f32 %v222_v38, 0.0 }
 0x2fa   :  { %226 = vst [vmem:[#allocation2] sm:$0x3] %v225_v40 }
 0x2fb   :  { %308 = shalt.err (!%p305_p4)
}
 0x2fc   :  { %s309_s26 = scalar_lea.hbm %s424_s7, 32 }
 0x2fd   :  { %p310_p5 = scmp.ne.s32.totalorder %s424_s7, %s309_s26  ;;  %p313_p6 = scmp.lt.u32.totalorder %s309_s26, %s424_s7 }
 0x2ff   :  { %p315_p7 = pnand %p313_p6, %p310_p5 }
 0x301   :  { %318 = shalt.err (!%p315_p7)
}
 0x302   :  { %236 = dma.vmem_to_hbm [thread:$0]  %s234_s24, 32, %s424_s7, [#allocation3]  }
 0x303   :  { %319 = dma.done.wait [#allocation3], 32  }
 0x304   :  { %320 = vsyncadd [#allocation3], 4294967264 }
 0x305   :  { %240 = vsyncpa [#allocation3], 1 }

</bundles_post_ra>
